<compile_context>
chip_gen: v7x
topology: tpu7x:2x2x1
jax: 0.10.0
libtpu: 0.0.40
codegen_flags: <defaults>
</compile_context>

<pallas_src>
import jax
import jax.numpy as jnp
from jax.experimental import pallas as pl
from jax.experimental.pallas import tpu as pltpu

EMB_SIZE = 512
HIDDEN = 256

_VMEM_LIMIT = 32 * 1024 * 1024  # <= physical VMEM on v5e/v6e/v7x


# ---------------------------------------------------------------------------
# Kernel 1: fused gamma+beta MLP (single MXU pass).
#   y:(B,512) f32, w1f:(512,512) bf16, b1f:(1,512) f32,
#   w2f:(512,2C) bf16 (block-diag), b2f:(1,2C) f32  ->  out:(B,2C) = [gamma|beta]
# ---------------------------------------------------------------------------
def fused_mlp_kernel(y_ref, w1_ref, b1_ref, w2_ref, b2_ref, out_ref):
    y = y_ref[...].astype(jnp.bfloat16)
    h = jnp.dot(y, w1_ref[...], preferred_element_type=jnp.float32)
    h = jnp.maximum(h + b1_ref[...], 0.0).astype(jnp.bfloat16)
    o = jnp.dot(h, w2_ref[...], preferred_element_type=jnp.float32)
    out_ref[...] = o + b2_ref[...]


def run_fused_mlp(y, w1f, b1f, w2f, b2f):
    B = y.shape[0]
    two_c = w2f.shape[1]
    vmem = pl.BlockSpec(memory_space=pltpu.MemorySpace.VMEM)
    return pl.pallas_call(
        fused_mlp_kernel,
        out_shape=jax.ShapeDtypeStruct((B, two_c), jnp.float32),
        in_specs=[vmem] * 5,
        out_specs=vmem,
        compiler_params=pltpu.CompilerParams(vmem_limit_bytes=_VMEM_LIMIT),
    )(y, w1f, b1f, w2f, b2f)


# ---------------------------------------------------------------------------
# Kernel 2: gridded per-row affine  out[r, s] = gamma[r, 0] * x[r, s] + beta[r, 0]
#   x viewed as (B*C, H*W); gamma/beta as (B*C, 1) broadcast along lanes.
# ---------------------------------------------------------------------------
def affine_apply_kernel(g_ref, b_ref, x_ref, o_ref):
    # Elementwise math in f32 (v5e VPU has no bf16 path); cast only at the store.
    xv = x_ref[...].astype(jnp.float32)
    o_ref[...] = (xv * g_ref[...] + b_ref[...]).astype(o_ref.dtype)


def _pick_tile(dim, max_tile):
    # Full dim is always a legal block; otherwise max_tile is a multiple of
    # (8, 128) units and Pallas handles the partial last block.
    return dim if dim <= max_tile else max_tile


def run_affine_apply(gamma_col, beta_col, x2, *, max_tile_r=512, max_tile_s=2048):
    R, S = x2.shape
    tile_r = _pick_tile(R, max_tile_r)   # multiple of 8 (or full dim)
    tile_s = _pick_tile(S, max_tile_s)   # multiple of 128 (or full dim)
    grid = (pl.cdiv(R, tile_r), pl.cdiv(S, tile_s))
    return pl.pallas_call(
        affine_apply_kernel,
        out_shape=jax.ShapeDtypeStruct((R, S), x2.dtype),
        grid=grid,
        in_specs=[
            pl.BlockSpec((tile_r, 1), lambda r, s: (r, 0)),       # gamma rows
            pl.BlockSpec((tile_r, 1), lambda r, s: (r, 0)),       # beta rows
            pl.BlockSpec((tile_r, tile_s), lambda r, s: (r, s)),  # x tile
        ],
        out_specs=pl.BlockSpec((tile_r, tile_s), lambda r, s: (r, s)),
        compiler_params=pltpu.CompilerParams(
            dimension_semantics=("parallel", "parallel"),
            vmem_limit_bytes=_VMEM_LIMIT,
        ),
    )(gamma_col, beta_col, x2)


# ---------------------------------------------------------------------------
# Parameters. make_params mirrors nn.Linear default init; module_init=True also
# applies the module's _initialize(): gamma.linear2 W=0,b=1; beta.linear2 W=0,b=0.
# Weights stored pre-transposed as (in_features, out_features).
# ---------------------------------------------------------------------------
def make_params(num_features, key, module_init=True):
    k1, k2, k3, k4, k5, k6, k7, k8 = jax.random.split(key, 8)
    lim1 = 1.0 / jnp.sqrt(float(EMB_SIZE))
    lim2 = 1.0 / jnp.sqrt(float(HIDDEN))
    w1_g = jax.random.uniform(k1, (EMB_SIZE, HIDDEN), jnp.float32, -lim1, lim1)
    b1_g = jax.random.uniform(k2, (1, HIDDEN), jnp.float32, -lim1, lim1)
    w1_b = jax.random.uniform(k3, (EMB_SIZE, HIDDEN), jnp.float32, -lim1, lim1)
    b1_b = jax.random.uniform(k4, (1, HIDDEN), jnp.float32, -lim1, lim1)
    if module_init:
        w2_g = jnp.zeros((HIDDEN, num_features), jnp.float32)
        b2_g = jnp.ones((1, num_features), jnp.float32)
        w2_b = jnp.zeros((HIDDEN, num_features), jnp.float32)
        b2_b = jnp.zeros((1, num_features), jnp.float32)
    else:
        w2_g = jax.random.uniform(k5, (HIDDEN, num_features), jnp.float32, -lim2, lim2)
        b2_g = jax.random.uniform(k6, (1, num_features), jnp.float32, -lim2, lim2)
        w2_b = jax.random.uniform(k7, (HIDDEN, num_features), jnp.float32, -lim2, lim2)
        b2_b = jax.random.uniform(k8, (1, num_features), jnp.float32, -lim2, lim2)
    return (w1_g, b1_g, w2_g, b2_g), (w1_b, b1_b, w2_b, b2_b)


def fuse_params(gamma_params, beta_params):
    """Build fused weights: concat W1/b1, block-diag W2, concat b2 (done once)."""
    w1_g, b1_g, w2_g, b2_g = gamma_params
    w1_b, b1_b, w2_b, b2_b = beta_params
    C = w2_g.shape[1]
    w1f = jnp.concatenate([w1_g, w1_b], axis=1)                       # (512, 512)
    b1f = jnp.concatenate([b1_g, b1_b], axis=1)                       # (1, 512)
    zeros = jnp.zeros((HIDDEN, C), jnp.float32)
    w2f = jnp.concatenate(
        [jnp.concatenate([w2_g, zeros], axis=1),
         jnp.concatenate([zeros, w2_b], axis=1)], axis=0)             # (512, 2C)
    b2f = jnp.concatenate([b2_g, b2_b], axis=1)                       # (1, 2C)
    return (w1f.astype(jnp.bfloat16), b1f, w2f.astype(jnp.bfloat16), b2f)


@jax.jit
def affine_forward(x, y, fused_params):
    B, C, H, W = x.shape
    gb = run_fused_mlp(y, *fused_params)          # (B, 2C) f32 = [gamma | beta]
    gamma = gb[:, :C].reshape(B * C, 1)
    beta = gb[:, C:].reshape(B * C, 1)
    x2 = x.reshape(B * C, H * W)
    out = run_affine_apply(gamma, beta, x2)
    return out.reshape(B, C, H, W)


# Pure-JAX f32 reference (mirrors the PyTorch module forward).
def ref_forward(x, y, gamma_params, beta_params):
    def mlp(y, w1, b1, w2, b2):
        return jnp.maximum(y @ w1 + b1, 0.0) @ w2 + b2
    g = mlp(y, *gamma_params)
    b = mlp(y, *beta_params)
    return g[:, :, None, None] * x + b[:, :, None, None]


if __name__ == "__main__":
    key = jax.random.PRNGKey(0)
    kx, ky, kp, kq = jax.random.split(key, 4)

    B, C, H, W = 2, 4, 16, 16          # num_features = C
    x = jax.random.normal(kx, (B, C, H, W), jnp.float32)
    y = jax.random.normal(ky, (B, EMB_SIZE), jnp.float32)

    # 1) Module default init (_initialize): gamma == 1, beta == 0 -> out == x.
    gparams, bparams = make_params(C, kp, module_init=True)
    out = jax.block_until_ready(affine_forward(x, y, fuse_params(gparams, bparams)))
    assert jnp.allclose(out, x, atol=1e-6), "module-init forward should be identity"

    # 2) Random second-layer weights to exercise the full fused MLP numerics
    #    (loose tolerance: bf16 weights/activations vs. f32 reference).
    gparams2, bparams2 = make_params(C, kq, module_init=False)
    out2 = jax.block_until_ready(affine_forward(x, y, fuse_params(gparams2, bparams2)))
    ref2 = ref_forward(x, y, gparams2, bparams2)
    assert jnp.allclose(out2, ref2, atol=3e-2, rtol=3e-2), "mismatch vs f32 reference"

    print("KERNEL_OK")
</pallas_src>

<mosaic_0001>
module attributes {stable_mosaic.version = 11 : i64} {
  func.func @fused_mlp_kernel(%arg0: memref<2x512xf32, #tpu.memory_space<vmem>>, %arg1: memref<512x512xbf16, #tpu.memory_space<vmem>>, %arg2: memref<1x512xf32, #tpu.memory_space<vmem>>, %arg3: memref<512x8xbf16, #tpu.memory_space<vmem>>, %arg4: memref<1x8xf32, #tpu.memory_space<vmem>>, %arg5: memref<2x8xf32, #tpu.memory_space<vmem>>) attributes {dimension_semantics = [], scalar_prefetch = 0 : i64, scratch_operands = 0 : i64, tpu.core_type = #tpu.core_type<tc>} {
    %c0 = arith.constant 0 : index
    %c0_0 = arith.constant 0 : index
    %0 = vector.load %arg0[%c0, %c0_0] : memref<2x512xf32, #tpu.memory_space<vmem>>, vector<2x512xf32>
    %1 = arith.truncf %0 : vector<2x512xf32> to vector<2x512xbf16>
    %c0_1 = arith.constant 0 : index
    %c0_2 = arith.constant 0 : index
    %2 = vector.load %arg1[%c0_1, %c0_2] : memref<512x512xbf16, #tpu.memory_space<vmem>>, vector<512x512xbf16>
    %cst = arith.constant dense<0.000000e+00> : vector<2x512xf32>
    %3 = tpu.matmul %1, %2, %cst {dimension_numbers = #tpu.dot_dimension_numbers<[1], [0], [0], [1], [0, 0, 1, 1], [], []>} : vector<2x512xbf16>, vector<512x512xbf16>, vector<2x512xf32> -> vector<2x512xf32>
    %c0_3 = arith.constant 0 : index
    %c0_4 = arith.constant 0 : index
    %4 = vector.load %arg2[%c0_3, %c0_4] : memref<1x512xf32, #tpu.memory_space<vmem>>, vector<1x512xf32>
    %5 = vector.broadcast %4 : vector<1x512xf32> to vector<2x512xf32>
    %6 = arith.addf %3, %5 : vector<2x512xf32>
    %cst_5 = arith.constant 0.000000e+00 : f32
    %7 = vector.broadcast %cst_5 : f32 to vector<2x512xf32>
    %8 = arith.maximumf %6, %7 : vector<2x512xf32>
    %9 = arith.truncf %8 : vector<2x512xf32> to vector<2x512xbf16>
    %c0_6 = arith.constant 0 : index
    %c0_7 = arith.constant 0 : index
    %10 = vector.load %arg3[%c0_6, %c0_7] : memref<512x8xbf16, #tpu.memory_space<vmem>>, vector<512x8xbf16>
    %cst_8 = arith.constant dense<0.000000e+00> : vector<2x8xf32>
    %11 = tpu.matmul %9, %10, %cst_8 {dimension_numbers = #tpu.dot_dimension_numbers<[1], [0], [0], [1], [0, 0, 1, 1], [], []>} : vector<2x512xbf16>, vector<512x8xbf16>, vector<2x8xf32> -> vector<2x8xf32>
    %c0_9 = arith.constant 0 : index
    %c0_10 = arith.constant 0 : index
    %12 = vector.load %arg4[%c0_9, %c0_10] : memref<1x8xf32, #tpu.memory_space<vmem>>, vector<1x8xf32>
    %13 = vector.broadcast %12 : vector<1x8xf32> to vector<2x8xf32>
    %14 = arith.addf %11, %13 : vector<2x8xf32>
    %c0_11 = arith.constant 0 : index
    %c0_12 = arith.constant 0 : index
    %15 = vector.load %arg5[%c0_11, %c0_12] : memref<2x8xf32, #tpu.memory_space<vmem>>, vector<2x8xf32>
    tpu.vector_store %arg5[%c0_11, %c0_12], %14 {strides = array<i32>} : memref<2x8xf32, #tpu.memory_space<vmem>>, vector<2x8xf32>,
    return
  }
}

module attributes {stable_mosaic.version = 11 : i64} {
  func.func @affine_apply_kernel(%arg0: i32, %arg1: i32, %arg2: memref<8x1xf32, #tpu.memory_space<vmem>>, %arg3: memref<8x1xf32, #tpu.memory_space<vmem>>, %arg4: memref<8x256xf32, #tpu.memory_space<vmem>>, %arg5: memref<8x256xf32, #tpu.memory_space<vmem>>) attributes {dimension_semantics = [#tpu.dimension_semantics<parallel>, #tpu.dimension_semantics<parallel>], iteration_bounds = array<i64: 1, 1>, scalar_prefetch = 0 : i64, scratch_operands = 0 : i64, tpu.core_type = #tpu.core_type<tc>, window_params = [{transform_indices = @transform_0, window_bounds = array<i64: 8, 1>}, {transform_indices = @transform_1, window_bounds = array<i64: 8, 1>}, {transform_indices = @transform_2, window_bounds = array<i64: 8, 256>}, {transform_indices = @transform_3, window_bounds = array<i64: 8, 256>}]} {
    %c0 = arith.constant 0 : index
    %c0_0 = arith.constant 0 : index
    %0 = vector.load %arg4[%c0, %c0_0] : memref<8x256xf32, #tpu.memory_space<vmem>>, vector<8x256xf32>
    %c0_1 = arith.constant 0 : index
    %c0_2 = arith.constant 0 : index
    %1 = vector.load %arg2[%c0_1, %c0_2] : memref<8x1xf32, #tpu.memory_space<vmem>>, vector<8x1xf32>
    %2 = vector.broadcast %1 : vector<8x1xf32> to vector<8x256xf32>
    %3 = arith.mulf %0, %2 : vector<8x256xf32>
    %c0_3 = arith.constant 0 : index
    %c0_4 = arith.constant 0 : index
    %4 = vector.load %arg3[%c0_3, %c0_4] : memref<8x1xf32, #tpu.memory_space<vmem>>, vector<8x1xf32>
    %5 = vector.broadcast %4 : vector<8x1xf32> to vector<8x256xf32>
    %6 = arith.addf %3, %5 : vector<8x256xf32>
    %c0_5 = arith.constant 0 : index
    %c0_6 = arith.constant 0 : index
    %7 = vector.load %arg5[%c0_5, %c0_6] : memref<8x256xf32, #tpu.memory_space<vmem>>, vector<8x256xf32>
    tpu.vector_store %arg5[%c0_5, %c0_6], %6 {strides = array<i32>} : memref<8x256xf32, #tpu.memory_space<vmem>>, vector<8x256xf32>,
    return
  }
  func.func @transform_0(%arg0: i32, %arg1: i32) -> (i32, i32) {
    %c0_i32 = arith.constant 0 : i32
    %c0_i32_0 = arith.constant 0 : i32
    return %arg0, %c0_i32 : i32, i32
  }
  func.func @transform_1(%arg0: i32, %arg1: i32) -> (i32, i32) {
    %c0_i32 = arith.constant 0 : i32
    %c0_i32_0 = arith.constant 0 : i32
    return %arg0, %c0_i32 : i32, i32
  }
  func.func @transform_2(%arg0: i32, %arg1: i32) -> (i32, i32) {
    %c0_i32 = arith.constant 0 : i32
    return %arg0, %arg1 : i32, i32
  }
  func.func @transform_3(%arg0: i32, %arg1: i32) -> (i32, i32) {
    %c0_i32 = arith.constant 0 : i32
    return %arg0, %arg1 : i32, i32
  }
}

</mosaic_0001>

<bundles_post_ra>
// kernel: affine_forward.3
= control target key start
LH: loop header
LB: loop body
LE: loop exit
PB: predicated region body
PF: predicated region fallthrough
CT: control target
= control target key end

     0   :  { %v40_v0 = vmov 0   ;;  %s79_s0 = inlined_call_operand.vmem [shape: f32[8,1], index: 0, kind: input, shape index: {}]   ;;  %s80_s1 = inlined_call_operand.vmem [shape: f32[8,1], index: 1, kind: input, shape index: {}]   ;;  %s81_s2 = inlined_call_operand.vmem [shape: f32[8,256], index: 2, kind: input, shape index: {}]   ;;  %s82_s3 = inlined_call_operand.vmem [shape: f32[8,256], index: 3, kind: output, shape index: {}]  }
   0x1   :  { %39 = vset.pattern.permute.xlu0 %v40_v0  ;;  %v16_v1 = vld [vmem:[%s79_s0] sm:$0xff]  ;;  %v15_v4 = vld [vmem:[%s81_s2 + $0x8] sm:$0xff] }
   0x2   :  { %19 = vperm.xlu0 %39, %v16_v1   ;;  %v24_v2 = vld [vmem:[%s80_s1] sm:$0xff] }
   0x3   :  { %v14_v3 = vld [vmem:[%s81_s2] sm:$0xff] }
   0x6   :  { %27 = vperm.xlu0 %39, %v24_v2  }
  0x81   :  { %v20_v5 = vpop.permute.xlu0 %19 }
  0x82   :  { %v22_v6 = vmul.f32 %v20_v5, %v14_v3  ;;  %v23_v7 = vmul.f32 %v20_v5, %v15_v4 }
  0x85   :  { %v28_v8 = vpop.permute.xlu0 %27 }
  0x86   :  { %v30_v9 = vadd.f32 %v28_v8, %v22_v6  ;;  %v31_v10 = vadd.f32 %v28_v8, %v23_v7 }
  0x88   :  { %32 = vst [vmem:[%s82_s3] sm:$0xff] %v30_v9  ;;  %33 = vst [vmem:[%s82_s3 + $0x8] sm:$0xff] %v31_v10 }

// kernel: affine_forward.2
= control target key start
LH: loop header
LB: loop body
LE: loop exit
PB: predicated region body
PF: predicated region fallthrough
CT: control target
= control target key end

     0   :  { %10 = vsyncpa [#allocation3], 0  ;;  %s1844_s18 = smov [#allocation2]   ;;  %s2011_s0 = inlined_call_operand.vmem [shape: f32[2,512], index: 0, kind: input, shape index: {}]   ;;  %s2012_s1 = inlined_call_operand.hbm [shape: bf16[512,512], index: 1, kind: input, shape index: {}]   ;;  %s2013_s2 = inlined_call_operand.vmem [shape: f32[1,512], index: 2, kind: input, shape index: {}]   ;;  %s2014_s3 = inlined_call_operand.vmem [shape: bf16[512,8], index: 3, kind: input, shape index: {}]   ;;  %s2015_s4 = inlined_call_operand.vmem [shape: f32[1,8], index: 4, kind: input, shape index: {}]   ;;  %s2016_s5 = inlined_call_operand.vmem [shape: f32[2,8], index: 5, kind: output, shape index: {}]  }
   0x1   :  { %s18_s19 = sshll.u32 %s1844_s18, 4  ;;  %s1820_s22 = scalar_lea.hbm %s2012_s1, 16384  ;;  %s19_s19 = int_to_ptr.vmem [resolvable:$true] %s18_s19 }
   0x2   :  { %p1821_p0 = scmp.ne.s32.totalorder %s2012_s1, %s1820_s22  ;;  %p1824_p1 = scmp.lt.u32.totalorder %s1820_s22, %s2012_s1 }
   0x4   :  { %p1826_p2 = pnand %p1824_p1, %p1821_p0 }
   0x6   :  { %1829 = shalt.err (!%p1826_p2)
}
   0x7   :  { %s1830_s27 = scalar_lea.vmem %s19_s19, 16384  ;;  %p1835_p4 = scmp.lt.s32.totalorder %s19_s19, %s19_s19 }
   0x8   :  { %p1831_p3 = scmp.ne.s32.totalorder %s19_s19, %s1830_s27  ;;  %p1836_p5 = scmp.lt.s32.totalorder %s1830_s27, %s1830_s27 }
   0xa   :  { %p1837_p6 = por %p1836_p5, %p1835_p4 }
   0xc   :  { %p1838_p7 = pnand %p1837_p6, %p1831_p3 }
   0xe   :  { %1841 = shalt.err (!%p1838_p7)
}
   0xf   :  { %s1845_s28 = smov 256   ;;  %s1846_s29 = smov 16  }
  0x10   :  { %24 = dma.hbm_to_vmem [thread:$0]  %s2012_s1, 16384, %s19_s19, [#allocation3], %s1845_s28, %s1845_s28, %s1846_s29  }
  0x11   :  { %1842 = dma.done.wait [#allocation3], 16384  }
  0x12   :  { %1843 = vsyncadd [#allocation3], 4294950912  ;;  %v1595_v0 = vld [vmem:[#allocation2 + $0x4] ss:$16 sps:$4 sm:$0xff]   ;;  %v1597_v1 = vld [vmem:[#allocation2 + $0xc] ss:$16 sps:$4 sm:$0xff]   ;;  %v41_v38 = vlaneseq }
  0x13   :  { %852 = vmatprep.subr.bf16.mxu0 %v1595_v0  ;;  %v1599_v2 = vld [vmem:[#allocation2] ss:$16 sps:$4 sm:$0xff]   ;;  %v1600_v3 = vld [vmem:[#allocation2 + $0x8] ss:$16 sps:$4 sm:$0xff]   ;;  %934 = vmatprep.subr.bf16.mxu1 %v1597_v1  ;;  %v1601_v4 = vld [vmem:[#allocation2 + $0x24] ss:$16 sps:$4 sm:$0xff]  }
  0x14   :  { %853 = vmatpush1.bf16.msra.mxu0 %v1599_v2  ;;  %935 = vmatpush1.bf16.msra.mxu1 %v1600_v3  ;;  %v1603_v5 = vld [vmem:[#allocation2 + $0x2c] ss:$16 sps:$4 sm:$0xff]   ;;  %v1605_v6 = vld [vmem:[#allocation2 + $0x20] ss:$16 sps:$4 sm:$0xff]   ;;  %v1606_v7 = vld [vmem:[#allocation2 + $0x28] ss:$16 sps:$4 sm:$0xff]  }
  0x15   :  { %854 = vmatprep.subr.bf16.mxu0 %v1601_v4  ;;  %936 = vmatprep.subr.bf16.mxu1 %v1603_v5  ;;  %v1607_v8 = vld [vmem:[#allocation2 + $0x44] ss:$16 sps:$4 sm:$0xff]   ;;  %v1609_v9 = vld [vmem:[#allocation2 + $0x4c] ss:$16 sps:$4 sm:$0xff]   ;;  %v1611_v10 = vld [vmem:[#allocation2 + $0x40] ss:$16 sps:$4 sm:$0xff]  }
  0x16   :  { %v1612_v11 = vld [vmem:[#allocation2 + $0x48] ss:$16 sps:$4 sm:$0xff]   ;;  %v1613_v12 = vld [vmem:[#allocation2 + $0x64] ss:$16 sps:$4 sm:$0xff]   ;;  %v1615_v13 = vld [vmem:[#allocation2 + $0x6c] ss:$16 sps:$4 sm:$0xff]  }
  0x17   :  { %v1617_v14 = vld [vmem:[#allocation2 + $0x60] ss:$16 sps:$4 sm:$0xff]   ;;  %v1618_v15 = vld [vmem:[#allocation2 + $0x68] ss:$16 sps:$4 sm:$0xff]   ;;  %v1619_v16 = vld [vmem:[#allocation2 + $0x84] ss:$16 sps:$4 sm:$0xff]  }
  0x18   :  { %855 = vmatpush1.bf16.msra.mxu0 %v1605_v6  ;;  %937 = vmatpush1.bf16.msra.mxu1 %v1606_v7  ;;  %v1621_v17 = vld [vmem:[#allocation2 + $0x8c] ss:$16 sps:$4 sm:$0xff]   ;;  %v1623_v18 = vld [vmem:[#allocation2 + $0x80] ss:$16 sps:$4 sm:$0xff]   ;;  %v1624_v19 = vld [vmem:[#allocation2 + $0x88] ss:$16 sps:$4 sm:$0xff]  }
  0x19   :  { %856 = vmatprep.subr.bf16.mxu0 %v1607_v8  ;;  %938 = vmatprep.subr.bf16.mxu1 %v1609_v9  ;;  %v1625_v20 = vld [vmem:[#allocation2 + $0xa4] ss:$16 sps:$4 sm:$0xff]   ;;  %v1627_v21 = vld [vmem:[#allocation2 + $0xac] ss:$16 sps:$4 sm:$0xff]   ;;  %v1629_v22 = vld [vmem:[#allocation2 + $0xa0] ss:$16 sps:$4 sm:$0xff]  }
  0x1a   :  { %v1630_v23 = vld [vmem:[#allocation2 + $0xa8] ss:$16 sps:$4 sm:$0xff]   ;;  %v1631_v24 = vld [vmem:[#allocation2 + $0xc4] ss:$16 sps:$4 sm:$0xff]   ;;  %v1633_v25 = vld [vmem:[#allocation2 + $0xcc] ss:$16 sps:$4 sm:$0xff]  }
  0x1b   :  { %v1635_v26 = vld [vmem:[#allocation2 + $0xc0] ss:$16 sps:$4 sm:$0xff]   ;;  %v1636_v27 = vld [vmem:[#allocation2 + $0xc8] ss:$16 sps:$4 sm:$0xff]   ;;  %v1637_v28 = vld [vmem:[#allocation2 + $0xe4] ss:$16 sps:$4 sm:$0xff]  }
  0x1c   :  { %857 = vmatpush1.bf16.msra.mxu0 %v1611_v10  ;;  %939 = vmatpush1.bf16.msra.mxu1 %v1612_v11  ;;  %v1639_v29 = vld [vmem:[#allocation2 + $0xec] ss:$16 sps:$4 sm:$0xff]   ;;  %v1641_v30 = vld [vmem:[#allocation2 + $0xe0] ss:$16 sps:$4 sm:$0xff]   ;;  %v1642_v31 = vld [vmem:[#allocation2 + $0xe8] ss:$16 sps:$4 sm:$0xff]  }
  0x1d   :  { %858 = vmatprep.subr.bf16.mxu0 %v1613_v12  ;;  %940 = vmatprep.subr.bf16.mxu1 %v1615_v13  ;;  %v1643_v32 = vld [vmem:[#allocation2 + $0x104] ss:$16 sps:$4 sm:$0xff]   ;;  %v1645_v33 = vld [vmem:[#allocation2 + $0x10c] ss:$16 sps:$4 sm:$0xff]   ;;  %v1647_v34 = vld [vmem:[#allocation2 + $0x100] ss:$16 sps:$4 sm:$0xff]  }
  0x1e   :  { %v1648_v35 = vld [vmem:[#allocation2 + $0x108] ss:$16 sps:$4 sm:$0xff]   ;;  %v1847_v36 = vmov 1983009808   ;;  %v1649_v39 = vld [vmem:[#allocation2 + $0x124] ss:$16 sps:$4 sm:$0xff]  }
  0x1f   :  { %v39_v37 = vunpack.c.l.s4 %v1847_v36  ;;  %v1651_v40 = vld [vmem:[#allocation2 + $0x12c] ss:$16 sps:$4 sm:$0xff]   ;;  %v1653_v41 = vld [vmem:[#allocation2 + $0x120] ss:$16 sps:$4 sm:$0xff]   ;;  %v1890_v43 = vshrl.u32 %v41_v38, 7  ;;  %vm1367_vm0 = vcmask 58368  }
  0x20   :  { %859 = vmatpush1.bf16.msra.mxu0 %v1617_v14  ;;  %941 = vmatpush1.bf16.msra.mxu1 %v1618_v15  ;;  %v1654_v44 = vld [vmem:[#allocation2 + $0x128] ss:$16 sps:$4 sm:$0xff]   ;;  %v1655_v45 = vld [vmem:[#allocation2 + $0x144] ss:$16 sps:$4 sm:$0xff]   ;;  %v1657_v46 = vld [vmem:[#allocation2 + $0x14c] ss:$16 sps:$4 sm:$0xff]  }
  0x21   :  { %860 = vmatprep.subr.bf16.mxu0 %v1619_v16  ;;  %942 = vmatprep.subr.bf16.mxu1 %v1621_v17  ;;  %v40_v42 = vunpack.c.0.s8 %v39_v37  ;;  %v1659_v47 = vld [vmem:[#allocation2 + $0x140] ss:$16 sps:$4 sm:$0xff]   ;;  %v1660_v48 = vld [vmem:[#allocation2 + $0x148] ss:$16 sps:$4 sm:$0xff]   ;;  %v1661_v50 = vld [vmem:[#allocation2 + $0x164] ss:$16 sps:$4 sm:$0xff]  }
  0x22   :  { %v1663_v51 = vld [vmem:[#allocation2 + $0x16c] ss:$16 sps:$4 sm:$0xff]   ;;  %v35_v52 = vld [vmem:[%s2011_s0] sm:$0xff]  ;;  %v1666_v55 = vld [vmem:[#allocation2 + $0x168] ss:$16 sps:$4 sm:$0xff]  }
  0x23   :  { %v43_v49 = vsub.s32 %v40_v42, %v1890_v43  ;;  %v1665_v53 = vld [vmem:[#allocation2 + $0x160] ss:$16 sps:$4 sm:$0xff]   ;;  %v1667_v56 = vld [vmem:[#allocation2 + $0x184] ss:$16 sps:$4 sm:$0xff]   ;;  %v1669_v57 = vld [vmem:[#allocation2 + $0x18c] ss:$16 sps:$4 sm:$0xff]   ;;  %v37_v4 = vcombine.high %v35_v52, %v35_v52 }
  0x24   :  { %861 = vmatpush1.bf16.msra.mxu0 %v1623_v18  ;;  %943 = vmatpush1.bf16.msra.mxu1 %v1624_v19  ;;  %v1671_v59 = vld [vmem:[#allocation2 + $0x180] ss:$16 sps:$4 sm:$0xff]   ;;  %v1672_v61 = vld [vmem:[#allocation2 + $0x188] ss:$16 sps:$4 sm:$0xff]   ;;  %v1673_v62 = vld [vmem:[#allocation2 + $0x1a4] ss:$16 sps:$4 sm:$0xff]  }
  0x25   :  { %862 = vmatprep.subr.bf16.mxu0 %v1625_v20  ;;  %944 = vmatprep.subr.bf16.mxu1 %v1627_v21  ;;  %v44_v54 = vrot.slane %v35_v52, %v43_v49  ;;  %v1675_v63 = vld [vmem:[#allocation2 + $0x1ac] ss:$16 sps:$4 sm:$0xff]   ;;  %v1677_v0 = vld [vmem:[#allocation2 + $0x1a0] ss:$16 sps:$4 sm:$0xff]   ;;  %v1678_v1 = vld [vmem:[#allocation2 + $0x1a8] ss:$16 sps:$4 sm:$0xff]   ;;  %v1896_v9 = vrot.slane %v37_v4, %v43_v49 }
  0x26   :  { %v1679_v2 = vld [vmem:[#allocation2 + $0x1c4] ss:$16 sps:$4 sm:$0xff]   ;;  %v1681_v3 = vld [vmem:[#allocation2 + $0x1cc] ss:$16 sps:$4 sm:$0xff]   ;;  %v1683_v5 = vld [vmem:[#allocation2 + $0x1c0] ss:$16 sps:$4 sm:$0xff]  }
  0x27   :  { %v52_v58 = vcombine.high %v44_v54, %v44_v54  ;;  %v1684_v6 = vld [vmem:[#allocation2 + $0x1c8] ss:$16 sps:$4 sm:$0xff]   ;;  %v1685_v7 = vld [vmem:[#allocation2 + $0x1e4] ss:$16 sps:$4 sm:$0xff]   ;;  %v1687_v8 = vld [vmem:[#allocation2 + $0x1ec] ss:$16 sps:$4 sm:$0xff]   ;;  %v53_v14 = vcombine.high %v1896_v9, %v1896_v9  ;;  %v58_v16 = vpack.c.bf16 %v44_v54, %v44_v54 }
  0x28   :  { %863 = vmatpush1.bf16.msra.mxu0 %v1629_v22  ;;  %945 = vmatpush1.bf16.msra.mxu1 %v1630_v23  ;;  %v1689_v10 = vld [vmem:[#allocation2 + $0x1e0] ss:$16 sps:$4 sm:$0xff]   ;;  %v1690_v11 = vld [vmem:[#allocation2 + $0x1e8] ss:$16 sps:$4 sm:$0xff]   ;;  %v1694_v12 = vld [vmem:[#allocation2 + $0x204] ss:$16 sps:$4 sm:$0xff]  }
  0x29   :  { %864 = vmatprep.subr.bf16.mxu0 %v1631_v24  ;;  %946 = vmatprep.subr.bf16.mxu1 %v1633_v25  ;;  %v59_v60 = vpack.c.bf16 %v52_v58, %v52_v58  ;;  %v1697_v13 = vld [vmem:[#allocation2 + $0x20c] ss:$16 sps:$4 sm:$0xff]   ;;  %v1692_v15 = vld [vmem:[#allocation2 + $0x200] ss:$16 sps:$4 sm:$0xff]   ;;  %v1695_v17 = vld [vmem:[#allocation2 + $0x208] ss:$16 sps:$4 sm:$0xff]   ;;  %v61_v20 = vpack.c.bf16 %v53_v14, %v53_v14 }
  0x2a   :  { %v1700_v18 = vld [vmem:[#allocation2 + $0x224] ss:$16 sps:$4 sm:$0xff]   ;;  %v1703_v19 = vld [vmem:[#allocation2 + $0x22c] ss:$16 sps:$4 sm:$0xff]   ;;  %v1698_v21 = vld [vmem:[#allocation2 + $0x220] ss:$16 sps:$4 sm:$0xff]  }
  0x2b   :  { %884 = vmatprep.mubr.bf16.mxu0 %v59_v60  ;;  %966 = vmatprep.mubr.bf16.mxu1 %v59_v60  ;;  %v1701_v22 = vld [vmem:[#allocation2 + $0x228] ss:$16 sps:$4 sm:$0xff]   ;;  %v1706_v23 = vld [vmem:[#allocation2 + $0x244] ss:$16 sps:$4 sm:$0xff]   ;;  %v1709_v24 = vld [vmem:[#allocation2 + $0x24c] ss:$16 sps:$4 sm:$0xff]  }
  0x2c   :  { %865 = vmatpush1.bf16.msra.mxu0 %v1635_v26  ;;  %947 = vmatpush1.bf16.msra.mxu1 %v1636_v27  ;;  %v1704_v25 = vld [vmem:[#allocation2 + $0x240] ss:$16 sps:$4 sm:$0xff]   ;;  %v1707_v26 = vld [vmem:[#allocation2 + $0x248] ss:$16 sps:$4 sm:$0xff]   ;;  %v1712_v27 = vld [vmem:[#allocation2 + $0x264] ss:$16 sps:$4 sm:$0xff]  }
  0x2d   :  { %866 = vmatprep.subr.bf16.mxu0 %v1637_v28  ;;  %948 = vmatprep.subr.bf16.mxu1 %v1639_v29  ;;  %v1715_v28 = vld [vmem:[#allocation2 + $0x26c] ss:$16 sps:$4 sm:$0xff]   ;;  %v1710_v29 = vld [vmem:[#allocation2 + $0x260] ss:$16 sps:$4 sm:$0xff]   ;;  %v1725_v38 = vld [vmem:[#allocation2 + $0x2a8] ss:$16 sps:$4 sm:$0xff]  }
  0x2e   :  { %v1727_v36 = vld [vmem:[#allocation2 + $0x2ac] ss:$16 sps:$4 sm:$0xff]   ;;  %v1722_v37 = vld [vmem:[#allocation2 + $0x2a0] ss:$16 sps:$4 sm:$0xff]   ;;  %v1731_v42 = vld [vmem:[#allocation2 + $0x2c8] ss:$16 sps:$4 sm:$0xff]  }
  0x2f   :  { %v1745_v49 = vld [vmem:[#allocation2 + $0x30c] ss:$16 sps:$4 sm:$0xff]   ;;  %v1748_v52 = vld [vmem:[#allocation2 + $0x324] ss:$16 sps:$4 sm:$0xff]   ;;  %v1746_v54 = vld [vmem:[#allocation2 + $0x320] ss:$16 sps:$4 sm:$0xff]  }
  0x30   :  { %867 = vmatpush1.bf16.msra.mxu0 %v1641_v30  ;;  %949 = vmatpush1.bf16.msra.mxu1 %v1642_v31  ;;  %v1713_v30 = vld [vmem:[#allocation2 + $0x268] ss:$16 sps:$4 sm:$0xff]   ;;  %v1718_v31 = vld [vmem:[#allocation2 + $0x284] ss:$16 sps:$4 sm:$0xff]   ;;  %v1752_v58 = vld [vmem:[#allocation2 + $0x340] ss:$16 sps:$4 sm:$0xff]  }
  0x31   :  { %868 = vmatprep.subr.bf16.mxu0 %v1643_v32  ;;  %950 = vmatprep.subr.bf16.mxu1 %v1645_v33  ;;  %v1721_v32 = vld [vmem:[#allocation2 + $0x28c] ss:$16 sps:$4 sm:$0xff]   ;;  %v1716_v33 = vld [vmem:[#allocation2 + $0x280] ss:$16 sps:$4 sm:$0xff]   ;;  %v1760_v60 = vld [vmem:[#allocation2 + $0x364] ss:$16 sps:$4 sm:$0xff]  }
  0x32   :  { %v1772_v4 = vld [vmem:[#allocation2 + $0x3a4] ss:$16 sps:$4 sm:$0xff]   ;;  %v1787_v14 = vld [vmem:[#allocation2 + $0x3ec] ss:$16 sps:$4 sm:$0xff]  }
  0x34   :  { %869 = vmatpush1.bf16.msra.mxu0 %v1647_v34  ;;  %951 = vmatpush1.bf16.msra.mxu1 %v1648_v35  ;;  %v1719_v34 = vld [vmem:[#allocation2 + $0x288] ss:$16 sps:$4 sm:$0xff]   ;;  %v1724_v35 = vld [vmem:[#allocation2 + $0x2a4] ss:$16 sps:$4 sm:$0xff]  }
  0x35   :  { %870 = vmatprep.subr.bf16.mxu0 %v1649_v39  ;;  %952 = vmatprep.subr.bf16.mxu1 %v1651_v40  ;;  %v1730_v39 = vld [vmem:[#allocation2 + $0x2c4] ss:$16 sps:$4 sm:$0xff]   ;;  %v1733_v40 = vld [vmem:[#allocation2 + $0x2cc] ss:$16 sps:$4 sm:$0xff]  }
  0x38   :  { %871 = vmatpush1.bf16.msra.mxu0 %v1653_v41  ;;  %953 = vmatpush1.bf16.msra.mxu1 %v1654_v44  ;;  %v1728_v41 = vld [vmem:[#allocation2 + $0x2c0] ss:$16 sps:$4 sm:$0xff]   ;;  %v1736_v44 = vld [vmem:[#allocation2 + $0x2e4] ss:$16 sps:$4 sm:$0xff]  }
  0x39   :  { %872 = vmatprep.subr.bf16.mxu0 %v1655_v45  ;;  %954 = vmatprep.subr.bf16.mxu1 %v1657_v46  ;;  %v1739_v45 = vld [vmem:[#allocation2 + $0x2ec] ss:$16 sps:$4 sm:$0xff]   ;;  %v1734_v46 = vld [vmem:[#allocation2 + $0x2e0] ss:$16 sps:$4 sm:$0xff]  }
  0x3c   :  { %873 = vmatpush1.bf16.msra.mxu0 %v1659_v47  ;;  %955 = vmatpush1.bf16.msra.mxu1 %v1660_v48  ;;  %v1737_v47 = vld [vmem:[#allocation2 + $0x2e8] ss:$16 sps:$4 sm:$0xff]   ;;  %v1742_v48 = vld [vmem:[#allocation2 + $0x304] ss:$16 sps:$4 sm:$0xff]  }
  0x3d   :  { %874 = vmatprep.subr.bf16.mxu0 %v1661_v50  ;;  %956 = vmatprep.subr.bf16.mxu1 %v1663_v51  ;;  %v1740_v50 = vld [vmem:[#allocation2 + $0x300] ss:$16 sps:$4 sm:$0xff]   ;;  %v1743_v51 = vld [vmem:[#allocation2 + $0x308] ss:$16 sps:$4 sm:$0xff]  }
  0x40   :  { %875 = vmatpush1.bf16.msra.mxu0 %v1665_v53  ;;  %957 = vmatpush1.bf16.msra.mxu1 %v1666_v55  ;;  %v1751_v53 = vld [vmem:[#allocation2 + $0x32c] ss:$16 sps:$4 sm:$0xff]   ;;  %v1749_v55 = vld [vmem:[#allocation2 + $0x328] ss:$16 sps:$4 sm:$0xff]  }
  0x41   :  { %876 = vmatprep.subr.bf16.mxu0 %v1667_v56  ;;  %958 = vmatprep.subr.bf16.mxu1 %v1669_v57  ;;  %v1754_v56 = vld [vmem:[#allocation2 + $0x344] ss:$16 sps:$4 sm:$0xff]   ;;  %v1757_v57 = vld [vmem:[#allocation2 + $0x34c] ss:$16 sps:$4 sm:$0xff]  }
  0x44   :  { %877 = vmatpush1.bf16.msra.mxu0 %v1671_v59  ;;  %959 = vmatpush1.bf16.msra.mxu1 %v1672_v61  ;;  %v1755_v59 = vld [vmem:[#allocation2 + $0x348] ss:$16 sps:$4 sm:$0xff]   ;;  %v1763_v61 = vld [vmem:[#allocation2 + $0x36c] ss:$16 sps:$4 sm:$0xff]  }
  0x45   :  { %878 = vmatprep.subr.bf16.mxu0 %v1673_v62  ;;  %960 = vmatprep.subr.bf16.mxu1 %v1675_v63  ;;  %v1758_v62 = vld [vmem:[#allocation2 + $0x360] ss:$16 sps:$4 sm:$0xff]   ;;  %v1761_v63 = vld [vmem:[#allocation2 + $0x368] ss:$16 sps:$4 sm:$0xff]  }
  0x48   :  { %879 = vmatpush1.bf16.msra.mxu0 %v1677_v0  ;;  %961 = vmatpush1.bf16.msra.mxu1 %v1678_v1  ;;  %v1766_v0 = vld [vmem:[#allocation2 + $0x384] ss:$16 sps:$4 sm:$0xff]   ;;  %v1769_v1 = vld [vmem:[#allocation2 + $0x38c] ss:$16 sps:$4 sm:$0xff]  }
  0x49   :  { %880 = vmatprep.subr.bf16.mxu0 %v1679_v2  ;;  %962 = vmatprep.subr.bf16.mxu1 %v1681_v3  ;;  %v1764_v2 = vld [vmem:[#allocation2 + $0x380] ss:$16 sps:$4 sm:$0xff]   ;;  %v1767_v3 = vld [vmem:[#allocation2 + $0x388] ss:$16 sps:$4 sm:$0xff]  }
  0x4c   :  { %881 = vmatpush1.bf16.msra.mxu0 %v1683_v5  ;;  %963 = vmatpush1.bf16.msra.mxu1 %v1684_v6  ;;  %v1775_v5 = vld [vmem:[#allocation2 + $0x3ac] ss:$16 sps:$4 sm:$0xff]   ;;  %v1770_v6 = vld [vmem:[#allocation2 + $0x3a0] ss:$16 sps:$4 sm:$0xff]  }
  0x4d   :  { %882 = vmatprep.subr.bf16.mxu0 %v1685_v7  ;;  %964 = vmatprep.subr.bf16.mxu1 %v1687_v8  ;;  %v1773_v7 = vld [vmem:[#allocation2 + $0x3a8] ss:$16 sps:$4 sm:$0xff]   ;;  %v1778_v8 = vld [vmem:[#allocation2 + $0x3c4] ss:$16 sps:$4 sm:$0xff]  }
  0x50   :  { %883 = vmatpush1.bf16.msra.mxu0 %v1689_v10  ;;  %965 = vmatpush1.bf16.msra.mxu1 %v1690_v11  ;;  %v1781_v10 = vld [vmem:[#allocation2 + $0x3cc] ss:$16 sps:$4 sm:$0xff]   ;;  %v1776_v11 = vld [vmem:[#allocation2 + $0x3c0] ss:$16 sps:$4 sm:$0xff]  }
  0x51   :  { %893 = vmatprep.subr.bf16.mxu0 %v1694_v12  ;;  %975 = vmatprep.subr.bf16.mxu1 %v1697_v13  ;;  %v1779_v12 = vld [vmem:[#allocation2 + $0x3c8] ss:$16 sps:$4 sm:$0xff]   ;;  %v1784_v13 = vld [vmem:[#allocation2 + $0x3e4] ss:$16 sps:$4 sm:$0xff]  }
  0x53   :  { %885 = vmatmul.mubr.bf16.vlgmr.msra.gmra.mrb[0].mxu0 %v58_v16  ;;  %967 = vmatmul.mubr.bf16.vlgmr.msra.gmra.mrb[0].mxu1 %v58_v16  ;;  %v1785_v16 = vld [vmem:[#allocation2 + $0x3e8] ss:$16 sps:$4 sm:$0xff]  }
  0x54   :  { %894 = vmatpush1.bf16.msra.mxu0 %v1692_v15  ;;  %976 = vmatpush1.bf16.msra.mxu1 %v1695_v17  ;;  %v1782_v15 = vld [vmem:[#allocation2 + $0x3e0] ss:$16 sps:$4 sm:$0xff]  }
  0x55   :  { %895 = vmatprep.subr.bf16.mxu0 %v1700_v18  ;;  %977 = vmatprep.subr.bf16.mxu1 %v1703_v19  ;;  %v1788_v17 = vld [vmem:[%s2014_s3 + $0x40] sm:$0xff]   ;;  %v60_v19 = vpack.c.bf16 %v1896_v9, %v1896_v9  ;;  %v1793_v9 = vld [vmem:[%s2014_s3 + $0xc8] sm:$0xff]  }
  0x56   :  { %925 = vmatprep.mubr.bf16.mxu0 %v61_v20  ;;  %1007 = vmatprep.mubr.bf16.mxu1 %v61_v20  ;;  %v1789_v18 = vld [vmem:[%s2014_s3 + $0xc0] sm:$0xff]  }
  0x57   :  { %v1790_v20 = vld [vmem:[%s2014_s3] sm:$0xff]  }
  0x58   :  { %896 = vmatpush1.bf16.msra.mxu0 %v1698_v21  ;;  %978 = vmatpush1.bf16.msra.mxu1 %v1701_v22  ;;  %v1791_v21 = vld [vmem:[%s2014_s3 + $0x80] sm:$0xff]   ;;  %v1792_v22 = vld [vmem:[%s2014_s3 + $0x48] sm:$0xff]  }
  0x59   :  { %897 = vmatprep.subr.bf16.mxu0 %v1706_v23  ;;  %979 = vmatprep.subr.bf16.mxu1 %v1709_v24  ;;  %v1794_v23 = vld [vmem:[%s2014_s3 + $0x8] sm:$0xff]  }
  0x5a   :  { %v1795_v24 = vld [vmem:[%s2014_s3 + $0x88] sm:$0xff]  }
  0x5c   :  { %898 = vmatpush1.bf16.msra.mxu0 %v1704_v25  ;;  %980 = vmatpush1.bf16.msra.mxu1 %v1707_v26  ;;  %v1796_v25 = vld [vmem:[%s2014_s3 + $0x50] sm:$0xff]  }
  0x5d   :  { %899 = vmatprep.subr.bf16.mxu0 %v1712_v27  ;;  %981 = vmatprep.subr.bf16.mxu1 %v1715_v28  ;;  %v1797_v26 = vld [vmem:[%s2014_s3 + $0xd0] sm:$0xff]  }
  0x5e   :  { %v1798_v27 = vld [vmem:[%s2014_s3 + $0x10] sm:$0xff]  }
  0x5f   :  { %v1799_v28 = vld [vmem:[%s2014_s3 + $0x90] sm:$0xff]  }
  0x60   :  { %900 = vmatpush1.bf16.msra.mxu0 %v1710_v29  ;;  %982 = vmatpush1.bf16.msra.mxu1 %v1713_v30  ;;  %v1800_v29 = vld [vmem:[%s2014_s3 + $0x58] sm:$0xff]  }
  0x61   :  { %901 = vmatprep.subr.bf16.mxu0 %v1718_v31  ;;  %983 = vmatprep.subr.bf16.mxu1 %v1721_v32  ;;  %v1801_v30 = vld [vmem:[%s2014_s3 + $0xd8] sm:$0xff]  }
  0x62   :  { %v1802_v31 = vld [vmem:[%s2014_s3 + $0x18] sm:$0xff]  }
  0x63   :  { %v1803_v32 = vld [vmem:[%s2014_s3 + $0x98] sm:$0xff]  }
  0x64   :  { %902 = vmatpush1.bf16.msra.mxu0 %v1716_v33  ;;  %984 = vmatpush1.bf16.msra.mxu1 %v1719_v34  ;;  %v1804_v33 = vld [vmem:[%s2014_s3 + $0x60] sm:$0xff]  }
  0x65   :  { %903 = vmatprep.subr.bf16.mxu0 %v1724_v35  ;;  %985 = vmatprep.subr.bf16.mxu1 %v1727_v36  ;;  %v1805_v34 = vld [vmem:[%s2014_s3 + $0xe0] sm:$0xff]  }
  0x66   :  { %v1806_v35 = vld [vmem:[%s2014_s3 + $0x20] sm:$0xff]  }
  0x67   :  { %v1807_v36 = vld [vmem:[%s2014_s3 + $0xa0] sm:$0xff]  }
  0x68   :  { %904 = vmatpush1.bf16.msra.mxu0 %v1722_v37  ;;  %986 = vmatpush1.bf16.msra.mxu1 %v1725_v38  ;;  %v1808_v37 = vld [vmem:[%s2014_s3 + $0x68] sm:$0xff]  }
  0x69   :  { %905 = vmatprep.subr.bf16.mxu0 %v1730_v39  ;;  %987 = vmatprep.subr.bf16.mxu1 %v1733_v40  ;;  %v1809_v38 = vld [vmem:[%s2014_s3 + $0xe8] sm:$0xff]  }
  0x6a   :  { %v1810_v39 = vld [vmem:[%s2014_s3 + $0x28] sm:$0xff]  }
  0x6b   :  { %v1811_v40 = vld [vmem:[%s2014_s3 + $0xa8] sm:$0xff]  }
  0x6c   :  { %906 = vmatpush1.bf16.msra.mxu0 %v1728_v41  ;;  %988 = vmatpush1.bf16.msra.mxu1 %v1731_v42  ;;  %v1812_v41 = vld [vmem:[%s2014_s3 + $0x70] sm:$0xff]  }
  0x6d   :  { %907 = vmatprep.subr.bf16.mxu0 %v1736_v44  ;;  %989 = vmatprep.subr.bf16.mxu1 %v1739_v45  ;;  %v1813_v42 = vld [vmem:[%s2014_s3 + $0xf0] sm:$0xff]  }
  0x6e   :  { %v1814_v44 = vld [vmem:[%s2014_s3 + $0x30] sm:$0xff]  }
  0x6f   :  { %v1815_v45 = vld [vmem:[%s2014_s3 + $0xb0] sm:$0xff]  }
  0x70   :  { %908 = vmatpush1.bf16.msra.mxu0 %v1734_v46  ;;  %990 = vmatpush1.bf16.msra.mxu1 %v1737_v47  ;;  %v1816_v46 = vld [vmem:[%s2014_s3 + $0x78] sm:$0xff]  }
  0x71   :  { %909 = vmatprep.subr.bf16.mxu0 %v1742_v48  ;;  %991 = vmatprep.subr.bf16.mxu1 %v1745_v49  ;;  %v1817_v47 = vld [vmem:[%s2014_s3 + $0xf8] sm:$0xff]  }
  0x72   :  { %v1818_v48 = vld [vmem:[%s2014_s3 + $0x38] sm:$0xff]  }
  0x73   :  { %v1819_v49 = vld [vmem:[%s2014_s3 + $0xb8] sm:$0xff]  }
  0x74   :  { %910 = vmatpush1.bf16.msra.mxu0 %v1740_v50  ;;  %992 = vmatpush1.bf16.msra.mxu1 %v1743_v51  ;;  %v194_v50 = vsub.s32 0, %v1890_v43  ;;  %v202_v51 = vsub.s32 2, %v1890_v43 }
  0x75   :  { %911 = vmatprep.subr.bf16.mxu0 %v1748_v52  ;;  %993 = vmatprep.subr.bf16.mxu1 %v1751_v53  ;;  %v190_v52 = vld [vmem:[%s2013_s2] sm:$0xf]  ;;  %v198_v53 = vsub.s32 1, %v1890_v43 }
  0x78   :  { %912 = vmatpush1.bf16.msra.mxu0 %v1746_v54  ;;  %994 = vmatpush1.bf16.msra.mxu1 %v1749_v55  ;;  %v206_v54 = vsub.s32 3, %v1890_v43  ;;  %v195_v55 = vrot.slane %v190_v52, %v194_v50 }
  0x79   :  { %913 = vmatprep.subr.bf16.mxu0 %v1754_v56  ;;  %995 = vmatprep.subr.bf16.mxu1 %v1757_v57  ;;  %v203_v56 = vrot.slane %v190_v52, %v202_v51  ;;  %v199_v57 = vrot.slane %v190_v52, %v198_v53 }
  0x7c   :  { %914 = vmatpush1.bf16.msra.mxu0 %v1752_v58  ;;  %996 = vmatpush1.bf16.msra.mxu1 %v1755_v59  ;;  %v207_v58 = vrot.slane %v190_v52, %v206_v54 }
  0x7d   :  { %915 = vmatprep.subr.bf16.mxu0 %v1760_v60  ;;  %997 = vmatprep.subr.bf16.mxu1 %v1763_v61 }
  0x80   :  { %916 = vmatpush1.bf16.msra.mxu0 %v1758_v62  ;;  %998 = vmatpush1.bf16.msra.mxu1 %v1761_v63 }
  0x81   :  { %917 = vmatprep.subr.bf16.mxu0 %v1766_v0  ;;  %999 = vmatprep.subr.bf16.mxu1 %v1769_v1 }
  0x84   :  { %918 = vmatpush1.bf16.msra.mxu0 %v1764_v2  ;;  %1000 = vmatpush1.bf16.msra.mxu1 %v1767_v3 }
  0x85   :  { %919 = vmatprep.subr.bf16.mxu0 %v1772_v4  ;;  %1001 = vmatprep.subr.bf16.mxu1 %v1775_v5 }
  0x88   :  { %920 = vmatpush1.bf16.msra.mxu0 %v1770_v6  ;;  %1002 = vmatpush1.bf16.msra.mxu1 %v1773_v7 }
  0x89   :  { %921 = vmatprep.subr.bf16.mxu0 %v1778_v8  ;;  %1003 = vmatprep.subr.bf16.mxu1 %v1781_v10 }
  0x8c   :  { %922 = vmatpush1.bf16.msra.mxu0 %v1776_v11  ;;  %1004 = vmatpush1.bf16.msra.mxu1 %v1779_v12 }
  0x8d   :  { %923 = vmatprep.subr.bf16.mxu0 %v1784_v13  ;;  %1005 = vmatprep.subr.bf16.mxu1 %v1787_v14 }
  0x90   :  { %924 = vmatpush1.bf16.msra.mxu0 %v1782_v15  ;;  %1006 = vmatpush1.bf16.msra.mxu1 %v1785_v16 }
  0x91   :  { %1535 = vmatprep.subr.bf16.mxu0 %v1788_v17  ;;  %1557 = vmatprep.subr.bf16.mxu1 %v1789_v18  ;;  %v1502_v17 = vld [vmem:[%s2015_s4] ss:$0 sm:$0xff] }
  0x93   :  { %926 = vmatmul.mubr.bf16.vlgmr.msra.gmra.mrb[0].mxu0 %v60_v19  ;;  %1008 = vmatmul.mubr.bf16.vlgmr.msra.gmra.mrb[0].mxu1 %v60_v19 }
  0x94   :  { %1536 = vmatpush3.bf16.msra.mxu0 %v1790_v20  ;;  %1558 = vmatpush3.bf16.msra.mxu1 %v1791_v21 }
  0x95   :  { %1537 = vmatprep.subr.bf16.mxu0 %v1792_v22  ;;  %1559 = vmatprep.subr.bf16.mxu1 %v1793_v9 }
  0x98   :  { %1538 = vmatpush3.bf16.msra.mxu0 %v1794_v23  ;;  %1560 = vmatpush3.bf16.msra.mxu1 %v1795_v24 }
  0x99   :  { %1539 = vmatprep.subr.bf16.mxu0 %v1796_v25  ;;  %1561 = vmatprep.subr.bf16.mxu1 %v1797_v26 }
  0x9c   :  { %1540 = vmatpush3.bf16.msra.mxu0 %v1798_v27  ;;  %1562 = vmatpush3.bf16.msra.mxu1 %v1799_v28 }
  0x9d   :  { %1541 = vmatprep.subr.bf16.mxu0 %v1800_v29  ;;  %1563 = vmatprep.subr.bf16.mxu1 %v1801_v30 }
  0xa0   :  { %1542 = vmatpush3.bf16.msra.mxu0 %v1802_v31  ;;  %1564 = vmatpush3.bf16.msra.mxu1 %v1803_v32 }
  0xa1   :  { %1543 = vmatprep.subr.bf16.mxu0 %v1804_v33  ;;  %1565 = vmatprep.subr.bf16.mxu1 %v1805_v34 }
  0xa4   :  { %1544 = vmatpush3.bf16.msra.mxu0 %v1806_v35  ;;  %1566 = vmatpush3.bf16.msra.mxu1 %v1807_v36 }
  0xa5   :  { %1545 = vmatprep.subr.bf16.mxu0 %v1808_v37  ;;  %1567 = vmatprep.subr.bf16.mxu1 %v1809_v38 }
  0xa8   :  { %1546 = vmatpush3.bf16.msra.mxu0 %v1810_v39  ;;  %1568 = vmatpush3.bf16.msra.mxu1 %v1811_v40 }
  0xa9   :  { %1547 = vmatprep.subr.bf16.mxu0 %v1812_v41  ;;  %1569 = vmatprep.subr.bf16.mxu1 %v1813_v42 }
  0xac   :  { %1548 = vmatpush3.bf16.msra.mxu0 %v1814_v44  ;;  %1570 = vmatpush3.bf16.msra.mxu1 %v1815_v45 }
  0xad   :  { %1549 = vmatprep.subr.bf16.mxu0 %v1816_v46  ;;  %1571 = vmatprep.subr.bf16.mxu1 %v1817_v47 }
  0xb0   :  { %1550 = vmatpush3.bf16.msra.mxu0 %v1818_v48  ;;  %1572 = vmatpush3.bf16.msra.mxu1 %v1819_v49 }
 0x166   :  { %v927_v59 = vpop.f32.mrb[0].mxu0  ;;  %v1009_v60 = vpop.f32.mrb[0].mxu1 }
 0x167   :  { %v1579_v61 = vadd.f32 %v927_v59, %v195_v55  ;;  %v1581_v62 = vadd.f32 %v1009_v60, %v203_v56  ;;  %v929_v63 = vpop.f32.mrb[1].mxu0  ;;  %v1011_v0 = vpop.f32.mrb[1].mxu1 }
 0x168   :  { %v1580_v1 = vadd.f32 %v929_v63, %v199_v57  ;;  %v1582_v2 = vadd.f32 %v1011_v0, %v207_v58  ;;  %v931_v3 = vpop.f32.mrb[2].mxu0  ;;  %v1013_v4 = vpop.f32.mrb[2].mxu1 }
 0x169   :  { %v1016_v5 = vmax.f32 %v1579_v61, 0.0  ;;  %v1018_v6 = vmax.f32 %v1581_v62, 0.0  ;;  %v932_v7 = vpop.f32.mrb[3].mxu0  ;;  %v1014_v8 = vpop.f32.mrb[3].mxu1 }
 0x16a   :  { %v1017_v10 = vmax.f32 %v1580_v1, 0.0  ;;  %v1019_v43 = vmax.f32 %v1582_v2, 0.0 }
 0x16b   :  { %v1020_v13 = vpack.c.bf16 %v1016_v5, %v1016_v5  ;;  %v1022_v14 = vpack.c.bf16 %v1018_v6, %v1018_v6 }
 0x16c   :  { %v1021_v11 = vpack.c.bf16 %v1017_v10, %v1017_v10  ;;  %v1023_v12 = vpack.c.bf16 %v1019_v43, %v1019_v43 }
 0x16e   :  { %1319 = vmatprep.mubr.bf16.mxu0 %v1021_v11  ;;  %1359 = vmatprep.mubr.bf16.mxu1 %v1023_v12 }
 0x16f   :  { %1320 = vmatmul.mubr.bf16.vlgmr.msra.gmra.mrb[4].mxu0 %v1020_v13  ;;  %1360 = vmatmul.mubr.bf16.vlgmr.msra.gmra.mrb[4].mxu1 %v1022_v14 }
 0x242   :  { %v1551_v15 = vpop.f32.mrb[4].mxu0  ;;  %v1573_v16 = vpop.f32.mrb[4].mxu1 }
 0x243   :  { %v1552_v18 = vpop.f32.mrb[5].mxu0  ;;  %v1574_v19 = vpop.f32.mrb[5].mxu1 }
 0x244   :  { %v1553_v20 = vadd.f32 %v1552_v18, %v1551_v15  ;;  %v1575_v21 = vadd.f32 %v1574_v19, %v1573_v16  ;;  %v1554_v22 = vpop.f32.mrb[6].mxu0  ;;  %v1576_v9 = vpop.f32.mrb[6].mxu1 }
 0x245   :  { %v1555_v23 = vpop.f32.mrb[7].mxu0  ;;  %v1577_v24 = vpop.f32.mrb[7].mxu1 }
 0x246   :  { %v1322_v25 = vadd.f32 %v1553_v20, %v1502_v17 }
 0x248   :  { %v1362_v26 = vadd.f32 %v1575_v21, %v1322_v25 }
 0x24a   :  { %1368 = vst.msk [vmem:[%s2016_s5] sm:$0x3] %vm1367_vm0, %v1362_v26 }
 0x24b   :  { %1373 = vsyncpa [#allocation3], 1 }

</bundles_post_ra>
